<compile_context>
chip_gen: v7x
topology: tpu7x:2x2x1
jax: 0.10.0
libtpu: 0.0.40
codegen_flags: <defaults>
</compile_context>

<pallas_src>
import functools

import jax
import jax.numpy as jnp
import numpy as np
from jax import lax
from jax.experimental import pallas as pl
from jax.experimental.pallas import tpu as pltpu


def _round_up(x, m):
    return (x + m - 1) // m * m


# Contract the last dim of x (K) with the last dim of W/V (PyTorch (H, K)
# layout) -> (M, H).  Avoids any host-side transpose of the weights.
_DN = (((1,), (1,)), ((), ()))


def _swiglu_kernel_acc(x_ref, w_ref, v_ref, bw_ref, bv_ref, o_ref,
                       accw_ref, accv_ref, *, beta):
    """K-reduction kernel (nk > 1). Grid = (M tiles, H tiles, K tiles)."""
    k = pl.program_id(2)

    @pl.when(k == 0)
    def _():
        # Fold the bias into the accumulator init (saves a finalize-time add).
        accw_ref[...] = jnp.broadcast_to(bw_ref[...], accw_ref.shape)
        accv_ref[...] = jnp.broadcast_to(bv_ref[...], accv_ref.shape)

    x = x_ref[...]
    accw_ref[...] += lax.dot_general(x, w_ref[...], _DN,
                                     preferred_element_type=jnp.float32)
    accv_ref[...] += lax.dot_general(x, v_ref[...], _DN,
                                     preferred_element_type=jnp.float32)

    @pl.when(k == pl.num_programs(2) - 1)
    def _():
        yv = accv_ref[...]
        gate = yv * jax.nn.sigmoid(beta * yv)          # Swish(beta), f32
        o_ref[...] = (accw_ref[...] * gate).astype(o_ref.dtype)


def _swiglu_kernel_single(x_ref, w_ref, v_ref, bw_ref, bv_ref, o_ref, *, beta):
    """No-reduction kernel (K fits one tile). Grid = (M tiles, H tiles)."""
    x = x_ref[...]
    yw = lax.dot_general(x, w_ref[...], _DN,
                         preferred_element_type=jnp.float32) + bw_ref[...]
    yv = lax.dot_general(x, v_ref[...], _DN,
                         preferred_element_type=jnp.float32) + bv_ref[...]
    gate = yv * jax.nn.sigmoid(beta * yv)
    o_ref[...] = (yw * gate).astype(o_ref.dtype)


def _vmem_limit_bytes(requested):
    """Generation-aware VMEM limit: leave headroom below physical VMEM."""
    try:
        phys = int(pltpu.get_tpu_info().vmem_capacity_bytes)
    except Exception:
        phys = 64 << 20                     # conservative (v7x per-TC VMEM)
    cap = max(phys - (8 << 20), 32 << 20)   # ~56 MiB on v7x, ~120 MiB v5e/v6e
    return int(min(max(requested, 32 << 20), cap))


def swiglu_pallas(x, w, bw, v, bv, *, beta=1.0, tm=768, tn=512, tk=1024,
                  compute_dtype=None):
    """SwiGLU forward.

    x: (..., K); w, v: (H, K) (PyTorch nn.Linear weight layout); bw, bv: (H,).
    tm/tn/tk are sweepable tile sizes (rows / out-cols / reduction).
    compute_dtype: dtype for x / weights on the MXU; defaults to bfloat16 when
    x is float32.  Accumulation, bias add and sigmoid stay in float32.
    """
    orig_shape = x.shape
    out_dtype = x.dtype
    K = orig_shape[-1]
    H = w.shape[0]

    if compute_dtype is None:
        compute_dtype = jnp.bfloat16 if x.dtype == jnp.float32 else x.dtype
    compute_dtype = jnp.dtype(compute_dtype)

    x2d = x.reshape(-1, K)
    M = x2d.shape[0]

    # ---- tile selection: MXU-aligned, lane-dense, tail-safe ----------------
    tm = max(8, min(int(tm), _round_up(M, 8)))
    tm = _round_up(tm, 8)
    M_pad = _round_up(M, tm)

    tn = max(128, min(int(tn), _round_up(H, 128)))
    tn = _round_up(tn, 128)
    Hp = _round_up(H, tn)
    nj = Hp // tn

    if K <= tk:
        tk_eff = _round_up(K, 128)          # single K step: block == full K_pad
        K_pad = tk_eff
        nk = 1
    else:
        tk_eff = _round_up(int(tk), 128)
        K_pad = _round_up(K, tk_eff)
        nk = K_pad // tk_eff

    ni = M_pad // tm
    # v7x has 2 TensorCores per chip: if both parallel grid axes would have
    # extent 1 for a decently sized M, split the M axis so both cores get
    # work (splitting M only duplicates the weight stream across M tiles, so
    # do it only when the grid would otherwise be fully serial).
    if ni == 1 and nj == 1 and M_pad >= 512:
        tm = _round_up((M_pad + 1) // 2, 8)
        M_pad = _round_up(M, tm)
        ni = M_pad // tm

    # ---- pad + cast inputs (weights stay in native (H, K) layout) ----------
    xp = jnp.pad(x2d.astype(compute_dtype), ((0, M_pad - M), (0, K_pad - K)))
    wp = jnp.pad(w.astype(compute_dtype), ((0, Hp - H), (0, K_pad - K)))
    vp = jnp.pad(v.astype(compute_dtype), ((0, Hp - H), (0, K_pad - K)))
    bwp = jnp.pad(bw.astype(jnp.float32), (0, Hp - H)).reshape(1, Hp)
    bvp = jnp.pad(bv.astype(jnp.float32), (0, Hp - H)).reshape(1, Hp)

    csize = compute_dtype.itemsize
    osize = jnp.dtype(out_dtype).itemsize
    beta = float(beta)

    if nk == 1:
        # No reduction: skip the accumulator scratch entirely.
        vmem_bytes = (
            2 * tm * K_pad * csize            # x tile (double-buffered)
            + 2 * 2 * tn * K_pad * csize      # W and V tiles
            + 2 * 2 * tn * 4                  # bias rows
            + 2 * tm * tn * osize             # output tile
        )
        out = pl.pallas_call(
            functools.partial(_swiglu_kernel_single, beta=beta),
            out_shape=jax.ShapeDtypeStruct((M_pad, Hp), out_dtype),
            grid_spec=pltpu.PrefetchScalarGridSpec(
                num_scalar_prefetch=0,
                grid=(ni, nj),
                in_specs=[
                    pl.BlockSpec((tm, K_pad), lambda i, j: (i, 0)),    # x
                    pl.BlockSpec((tn, K_pad), lambda i, j: (j, 0)),    # W (H,K)
                    pl.BlockSpec((tn, K_pad), lambda i, j: (j, 0)),    # V (H,K)
                    pl.BlockSpec((1, tn), lambda i, j: (0, j)),        # b_W
                    pl.BlockSpec((1, tn), lambda i, j: (0, j)),        # b_V
                ],
                out_specs=pl.BlockSpec((tm, tn), lambda i, j: (i, j)),
            ),
            compiler_params=pltpu.CompilerParams(
                dimension_semantics=("parallel", "parallel"),
                vmem_limit_bytes=_vmem_limit_bytes(
                    int(1.5 * vmem_bytes) + (1 << 20)),
            ),
        )(xp, wp, vp, bwp, bvp)
    else:
        vmem_bytes = (
            2 * tm * tk_eff * csize           # x tile (double-buffered)
            + 2 * 2 * tn * tk_eff * csize     # W and V tiles
            + 2 * 2 * tn * 4                  # bias rows
            + 2 * tm * tn * osize             # output tile
            + 2 * tm * tn * 4                 # f32 accumulators (W, V)
        )
        out = pl.pallas_call(
            functools.partial(_swiglu_kernel_acc, beta=beta),
            out_shape=jax.ShapeDtypeStruct((M_pad, Hp), out_dtype),
            grid_spec=pltpu.PrefetchScalarGridSpec(
                num_scalar_prefetch=0,
                grid=(ni, nj, nk),                       # K reduction innermost
                in_specs=[
                    pl.BlockSpec((tm, tk_eff), lambda i, j, k: (i, k)),  # x
                    pl.BlockSpec((tn, tk_eff), lambda i, j, k: (j, k)),  # W
                    pl.BlockSpec((tn, tk_eff), lambda i, j, k: (j, k)),  # V
                    pl.BlockSpec((1, tn), lambda i, j, k: (0, j)),       # b_W
                    pl.BlockSpec((1, tn), lambda i, j, k: (0, j)),       # b_V
                ],
                out_specs=pl.BlockSpec((tm, tn), lambda i, j, k: (i, j)),
                scratch_shapes=[pltpu.VMEM((tm, tn), jnp.float32),
                                pltpu.VMEM((tm, tn), jnp.float32)],
            ),
            compiler_params=pltpu.CompilerParams(
                dimension_semantics=("parallel", "parallel", "arbitrary"),
                vmem_limit_bytes=_vmem_limit_bytes(
                    int(1.5 * vmem_bytes) + (1 << 20)),
            ),
        )(xp, wp, vp, bwp, bvp)

    out = out[:M, :H]
    return out.reshape(*orig_shape[:-1], H)


def swiglu_ref(x, w, bw, v, bv, *, beta=1.0):
    hp = jax.lax.Precision.HIGHEST
    yw = jnp.einsum("...k,hk->...h", x, w, precision=hp) + bw
    yv = jnp.einsum("...k,hk->...h", x, v, precision=hp) + bv
    return yw * (yv * jax.nn.sigmoid(beta * yv))


if __name__ == "__main__":
    beta = 1.0
    key = jax.random.PRNGKey(0)

    # --- test 1: small module-shaped input (single-K-tile kernel path) ------
    batch, seq, in_features, hidden_features = 2, 8, 32, 32
    kx, kw, kbw, kv, kbv, k2 = jax.random.split(key, 6)

    x = jax.random.normal(kx, (batch, seq, in_features), dtype=jnp.float32)
    # PyTorch nn.Linear init: uniform(-1/sqrt(K), 1/sqrt(K)).
    bound = 1.0 / np.sqrt(in_features)
    w = jax.random.uniform(kw, (hidden_features, in_features), jnp.float32,
                           -bound, bound)
    bw = jax.random.uniform(kbw, (hidden_features,), jnp.float32, -bound, bound)
    v = jax.random.uniform(kv, (hidden_features, in_features), jnp.float32,
                           -bound, bound)
    bv = jax.random.uniform(kbv, (hidden_features,), jnp.float32, -bound, bound)

    ref = swiglu_ref(x, w, bw, v, bv, beta=beta)

    # Explicit f32 compute path: tight correctness check.
    out_f32 = jax.block_until_ready(
        swiglu_pallas(x, w, bw, v, bv, beta=beta, compute_dtype=jnp.float32))
    np.testing.assert_allclose(np.asarray(out_f32), np.asarray(ref),
                               rtol=1e-4, atol=1e-4)

    # Default (bf16-on-MXU / f32-accumulate) production path: loose check.
    out_bf16 = jax.block_until_ready(swiglu_pallas(x, w, bw, v, bv, beta=beta))
    np.testing.assert_allclose(np.asarray(out_bf16), np.asarray(ref),
                               rtol=3e-2, atol=3e-2)

    # --- test 2: force the K-reduction (nk > 1) accumulator kernel path -----
    K2, H2 = 256, 128
    kx2, kw2, kbw2, kv2, kbv2 = jax.random.split(k2, 5)
    x2 = jax.random.normal(kx2, (batch, seq, K2), dtype=jnp.float32)
    bound2 = 1.0 / np.sqrt(K2)
    w2 = jax.random.uniform(kw2, (H2, K2), jnp.float32, -bound2, bound2)
    bw2 = jax.random.uniform(kbw2, (H2,), jnp.float32, -bound2, bound2)
    v2 = jax.random.uniform(kv2, (H2, K2), jnp.float32, -bound2, bound2)
    bv2 = jax.random.uniform(kbv2, (H2,), jnp.float32, -bound2, bound2)

    ref2 = swiglu_ref(x2, w2, bw2, v2, bv2, beta=beta)
    out2 = jax.block_until_ready(
        swiglu_pallas(x2, w2, bw2, v2, bv2, beta=beta, tk=128,
                      compute_dtype=jnp.float32))
    np.testing.assert_allclose(np.asarray(out2), np.asarray(ref2),
                               rtol=1e-4, atol=1e-4)

    print("KERNEL_OK")
</pallas_src>

<mosaic_0001>
module attributes {stable_mosaic.version = 11 : i64} {
  func.func @_swiglu_kernel_single(%arg0: i32, %arg1: i32, %arg2: memref<16x128xf32, #tpu.memory_space<vmem>>, %arg3: memref<128x128xf32, #tpu.memory_space<vmem>>, %arg4: memref<128x128xf32, #tpu.memory_space<vmem>>, %arg5: memref<1x128xf32, #tpu.memory_space<vmem>>, %arg6: memref<1x128xf32, #tpu.memory_space<vmem>>, %arg7: memref<16x128xf32, #tpu.memory_space<vmem>>) attributes {dimension_semantics = [#tpu.dimension_semantics<parallel>, #tpu.dimension_semantics<parallel>], iteration_bounds = array<i64: 1, 1>, scalar_prefetch = 0 : i64, scratch_operands = 0 : i64, tpu.core_type = #tpu.core_type<tc>, window_params = [{transform_indices = @transform_0, window_bounds = array<i64: 16, 128>}, {transform_indices = @transform_1, window_bounds = array<i64: 128, 128>}, {transform_indices = @transform_2, window_bounds = array<i64: 128, 128>}, {transform_indices = @transform_3, window_bounds = array<i64: 1, 128>}, {transform_indices = @transform_4, window_bounds = array<i64: 1, 128>}, {transform_indices = @transform_5, window_bounds = array<i64: 16, 128>}]} {
    %c0 = arith.constant 0 : index
    %c0_0 = arith.constant 0 : index
    %0 = vector.load %arg2[%c0, %c0_0] : memref<16x128xf32, #tpu.memory_space<vmem>>, vector<16x128xf32>
    %c0_1 = arith.constant 0 : index
    %c0_2 = arith.constant 0 : index
    %1 = vector.load %arg3[%c0_1, %c0_2] : memref<128x128xf32, #tpu.memory_space<vmem>>, vector<128x128xf32>
    %cst = arith.constant dense<0.000000e+00> : vector<16x128xf32>
    %2 = tpu.matmul %0, %1, %cst {dimension_numbers = #tpu.dot_dimension_numbers<[1], [1], [0], [0], [0, 0, 1, 0], [], []>} : vector<16x128xf32>, vector<128x128xf32>, vector<16x128xf32> -> vector<16x128xf32>
    %c0_3 = arith.constant 0 : index
    %c0_4 = arith.constant 0 : index
    %3 = vector.load %arg5[%c0_3, %c0_4] : memref<1x128xf32, #tpu.memory_space<vmem>>, vector<1x128xf32>
    %4 = vector.broadcast %3 : vector<1x128xf32> to vector<16x128xf32>
    %5 = arith.addf %2, %4 : vector<16x128xf32>
    %c0_5 = arith.constant 0 : index
    %c0_6 = arith.constant 0 : index
    %6 = vector.load %arg4[%c0_5, %c0_6] : memref<128x128xf32, #tpu.memory_space<vmem>>, vector<128x128xf32>
    %cst_7 = arith.constant dense<0.000000e+00> : vector<16x128xf32>
    %7 = tpu.matmul %0, %6, %cst_7 {dimension_numbers = #tpu.dot_dimension_numbers<[1], [1], [0], [0], [0, 0, 1, 0], [], []>} : vector<16x128xf32>, vector<128x128xf32>, vector<16x128xf32> -> vector<16x128xf32>
    %c0_8 = arith.constant 0 : index
    %c0_9 = arith.constant 0 : index
    %8 = vector.load %arg6[%c0_8, %c0_9] : memref<1x128xf32, #tpu.memory_space<vmem>>, vector<1x128xf32>
    %9 = vector.broadcast %8 : vector<1x128xf32> to vector<16x128xf32>
    %10 = arith.addf %7, %9 : vector<16x128xf32>
    %cst_10 = arith.constant 1.000000e+00 : f32
    %11 = vector.broadcast %cst_10 : f32 to vector<16x128xf32>
    %12 = arith.mulf %11, %10 : vector<16x128xf32>
    %13 = arith.negf %12 : vector<16x128xf32>
    %14 = math.exp %13 : vector<16x128xf32>
    %cst_11 = arith.constant 1.000000e+00 : f32
    %15 = vector.broadcast %cst_11 : f32 to vector<16x128xf32>
    %16 = arith.addf %15, %14 : vector<16x128xf32>
    %17 = arith.divf %15, %16 : vector<16x128xf32>
    %18 = arith.mulf %10, %17 : vector<16x128xf32>
    %19 = arith.mulf %5, %18 : vector<16x128xf32>
    %c0_12 = arith.constant 0 : index
    %c0_13 = arith.constant 0 : index
    %20 = vector.load %arg7[%c0_12, %c0_13] : memref<16x128xf32, #tpu.memory_space<vmem>>, vector<16x128xf32>
    tpu.vector_store %arg7[%c0_12, %c0_13], %19 {strides = array<i32>} : memref<16x128xf32, #tpu.memory_space<vmem>>, vector<16x128xf32>,
    return
  }
  func.func @transform_0(%arg0: i32, %arg1: i32) -> (i32, i32) {
    %c0_i32 = arith.constant 0 : i32
    %c0_i32_0 = arith.constant 0 : i32
    return %arg0, %c0_i32 : i32, i32
  }
  func.func @transform_1(%arg0: i32, %arg1: i32) -> (i32, i32) {
    %c0_i32 = arith.constant 0 : i32
    %c0_i32_0 = arith.constant 0 : i32
    return %arg1, %c0_i32 : i32, i32
  }
  func.func @transform_2(%arg0: i32, %arg1: i32) -> (i32, i32) {
    %c0_i32 = arith.constant 0 : i32
    %c0_i32_0 = arith.constant 0 : i32
    return %arg1, %c0_i32 : i32, i32
  }
  func.func @transform_3(%arg0: i32, %arg1: i32) -> (i32, i32) {
    %c0_i32 = arith.constant 0 : i32
    %c0_i32_0 = arith.constant 0 : i32
    return %c0_i32, %arg1 : i32, i32
  }
  func.func @transform_4(%arg0: i32, %arg1: i32) -> (i32, i32) {
    %c0_i32 = arith.constant 0 : i32
    %c0_i32_0 = arith.constant 0 : i32
    return %c0_i32, %arg1 : i32, i32
  }
  func.func @transform_5(%arg0: i32, %arg1: i32) -> (i32, i32) {
    %c0_i32 = arith.constant 0 : i32
    return %arg0, %arg1 : i32, i32
  }
}

</mosaic_0001>

<bundles_post_ra>
// kernel: tpu_custom_call.1
= control target key start
LH: loop header
LB: loop body
LE: loop exit
PB: predicated region body
PF: predicated region fallthrough
CT: control target
= control target key end

     0   :  { %10 = vsyncpa [#allocation3], 0  ;;  %s687_s0 = inlined_call_operand.hbm [shape: f32[16,128], index: 0, kind: input, shape index: {}]   ;;  %s688_s1 = inlined_call_operand.hbm [shape: f32[128,128], index: 1, kind: input, shape index: {}]   ;;  %s689_s2 = inlined_call_operand.hbm [shape: f32[128,128], index: 2, kind: input, shape index: {}]   ;;  %s690_s3 = inlined_call_operand.vmem [shape: f32[1,128], index: 3, kind: input, shape index: {}]   ;;  %s691_s4 = inlined_call_operand.vmem [shape: f32[1,128], index: 4, kind: input, shape index: {}]   ;;  %s692_s5 = inlined_call_operand.hbm [shape: f32[16,128], index: 5, kind: output, shape index: {}]  }
   0x1   :  { %11 = vsyncpa [#allocation6], 0 }
   0x2   :  { %12 = vsyncpa [#allocation4], 0  ;;  %s578_s18 = smov [#allocation5]   ;;  %s579_s20 = smov [#allocation2]  }
   0x3   :  { %s30_s19 = sshll.u32 %s578_s18, 4  ;;  %s18_s21 = sshll.u32 %s579_s20, 4  ;;  %s31_s19 = int_to_ptr.vmem [resolvable:$true] %s30_s19  ;;  %s614_s21 = int_to_ptr.vmem [resolvable:$true] %s18_s21 }
   0x4   :  { %s484_s24 = scalar_lea.hbm %s688_s1, 2048 }
   0x5   :  { %p485_p0 = scmp.ne.s32.totalorder %s688_s1, %s484_s24  ;;  %p488_p1 = scmp.lt.u32.totalorder %s484_s24, %s688_s1 }
   0x7   :  { %p490_p2 = pnand %p488_p1, %p485_p0 }
   0x9   :  { %493 = shalt.err (!%p490_p2)
}
   0xa   :  { %s494_s29 = scalar_lea.vmem %s31_s19, 2048  ;;  %p499_p4 = scmp.lt.s32.totalorder %s31_s19, %s31_s19 }
   0xb   :  { %p495_p3 = scmp.ne.s32.totalorder %s31_s19, %s494_s29  ;;  %p500_p5 = scmp.lt.s32.totalorder %s494_s29, %s494_s29 }
   0xd   :  { %p501_p6 = por %p500_p5, %p499_p4 }
   0xf   :  { %p502_p7 = pnand %p501_p6, %p495_p3 }
  0x11   :  { %505 = shalt.err (!%p502_p7)
}
  0x12   :  { %s580_s30 = smov 128   ;;  %s581_s6 = smov 8  }
  0x13   :  { %36 = dma.hbm_to_vmem [thread:$0]  %s688_s1, 2048, %s31_s19, [#allocation6], %s580_s30, %s580_s30, %s581_s6  }
  0x14   :  { %s506_s11 = scalar_lea.hbm %s687_s0, 256 }
  0x15   :  { %p507_p8 = scmp.ne.s32.totalorder %s687_s0, %s506_s11  ;;  %p510_p9 = scmp.lt.u32.totalorder %s506_s11, %s687_s0 }
  0x17   :  { %p512_p10 = pnand %p510_p9, %p507_p8 }
  0x19   :  { %515 = shalt.err (!%p512_p10)
}
  0x1a   :  { %s516_s16 = scalar_lea.vmem %s614_s21, 256  ;;  %p521_p12 = scmp.lt.s32.totalorder %s614_s21, %s614_s21 }
  0x1b   :  { %p517_p11 = scmp.ne.s32.totalorder %s614_s21, %s516_s16  ;;  %p522_p13 = scmp.lt.s32.totalorder %s516_s16, %s516_s16 }
  0x1d   :  { %p523_p0 = por %p522_p13, %p521_p12 }
  0x1f   :  { %p524_p1 = pnand %p523_p0, %p517_p11 }
  0x21   :  { %527 = shalt.err (!%p524_p1)
}
  0x22   :  { %24 = dma.hbm_to_vmem [thread:$0]  %s687_s0, 256, %s614_s21, [#allocation3], %s580_s30, %s580_s30, %s581_s6  }
  0x23   :  { %s582_s18 = smov [#allocation7]   ;;  %s528_s23 = scalar_lea.hbm %s689_s2, 2048 }
  0x24   :  { %s42_s19 = sshll.u32 %s582_s18, 4  ;;  %p529_p2 = scmp.ne.s32.totalorder %s689_s2, %s528_s23  ;;  %s43_s19 = int_to_ptr.vmem [resolvable:$true] %s42_s19 }
  0x25   :  { %p532_p3 = scmp.lt.u32.totalorder %s528_s23, %s689_s2 }
  0x27   :  { %p534_p4 = pnand %p532_p3, %p529_p2 }
  0x29   :  { %537 = shalt.err (!%p534_p4)
}
  0x2a   :  { %s538_s28 = scalar_lea.vmem %s43_s19, 2048  ;;  %p543_p6 = scmp.lt.s32.totalorder %s43_s19, %s43_s19 }
  0x2b   :  { %p539_p5 = scmp.ne.s32.totalorder %s43_s19, %s538_s28  ;;  %p544_p7 = scmp.lt.s32.totalorder %s538_s28, %s538_s28 }
  0x2d   :  { %p545_p8 = por %p544_p7, %p543_p6 }
  0x2f   :  { %p546_p9 = pnand %p545_p8, %p539_p5 }
  0x31   :  { %549 = shalt.err (!%p546_p9)
}
  0x32   :  { %48 = dma.hbm_to_vmem [thread:$0]  %s689_s2, 2048, %s43_s19, [#allocation6], %s580_s30, %s580_s30, %s581_s6  }
  0x33   :  { %572 = dma.done.wait [#allocation3], 256  }
  0x34   :  { %573 = vsyncadd [#allocation3], 4294967040 }
  0x35   :  { %574 = dma.done.wait [#allocation6], 4096  }
  0x36   :  { %575 = vsyncadd [#allocation6], 4294963200  ;;  %v162_v0 = vld [vmem:[#allocation7] sm:$0xff]  ;;  %v163_v1 = vld [vmem:[#allocation7 + $0x8] sm:$0xff] }
  0x37   :  { %v164_v2 = vld [vmem:[#allocation7 + $0x10] sm:$0xff]  ;;  %v438_v3 = vpack.c.bf16 %v163_v1, %v162_v0  ;;  %v165_v4 = vld [vmem:[#allocation7 + $0x18] sm:$0xff]  ;;  %v64_v6 = vld [vmem:[#allocation5] sm:$0xff] }
  0x38   :  { %v442_v5 = vpack.c.bf16 %v165_v4, %v164_v2  ;;  %v65_v7 = vld [vmem:[#allocation5 + $0x8] sm:$0xff]  ;;  %v66_v9 = vld [vmem:[#allocation5 + $0x10] sm:$0xff]  ;;  %v67_v10 = vld [vmem:[#allocation5 + $0x18] sm:$0xff] }
  0x39   :  { %439 = vmatprep.subr.bf16.mxu1 %v438_v3  ;;  %v406_v8 = vpack.c.bf16 %v65_v7, %v64_v6  ;;  %v410_v11 = vpack.c.bf16 %v67_v10, %v66_v9  ;;  %v166_v12 = vld [vmem:[#allocation7 + $0x20] sm:$0xff]  ;;  %v167_v13 = vld [vmem:[#allocation7 + $0x28] sm:$0xff]  ;;  %v62_v14 = vld [vmem:[#allocation2] sm:$0xff] }
  0x3a   :  { %441 = vmatpush3.bf16.xpose.msra.mxu1 %v438_v3  ;;  %v446_v15 = vpack.c.bf16 %v167_v13, %v166_v12  ;;  %v68_v16 = vld [vmem:[#allocation5 + $0x20] sm:$0xff]  ;;  %v69_v17 = vld [vmem:[#allocation5 + $0x28] sm:$0xff]  ;;  %403 = vmatprep.mubr.f32.mxu1 %v62_v14  ;;  %v168_v19 = vld [vmem:[#allocation7 + $0x30] sm:$0xff] }
  0x3b   :  { %443 = vmatprep.subr.bf16.mxu1 %v442_v5  ;;  %407 = vmatprep.subr.bf16.mxu0 %v406_v8  ;;  %v414_v18 = vpack.c.bf16 %v69_v17, %v68_v16  ;;  %v169_v20 = vld [vmem:[#allocation7 + $0x38] sm:$0xff]  ;;  %v70_v22 = vld [vmem:[#allocation5 + $0x30] sm:$0xff]  ;;  %v170_v25 = vld [vmem:[#allocation7 + $0x40] sm:$0xff] }
  0x3c   :  { %409 = vmatpush3.bf16.xpose.msra.mxu0 %v406_v8  ;;  %368 = vmatprep.mubr.f32.mxu0 %v62_v14  ;;  %v450_v21 = vpack.c.bf16 %v169_v20, %v168_v19  ;;  %v71_v23 = vld [vmem:[#allocation5 + $0x38] sm:$0xff]  ;;  %v171_v26 = vld [vmem:[#allocation7 + $0x48] sm:$0xff]  ;;  %v72_v28 = vld [vmem:[#allocation5 + $0x40] sm:$0xff] }
  0x3d   :  { %411 = vmatprep.subr.bf16.mxu0 %v410_v11  ;;  %v418_v24 = vpack.c.bf16 %v71_v23, %v70_v22  ;;  %v454_v27 = vpack.c.bf16 %v171_v26, %v170_v25  ;;  %v73_v29 = vld [vmem:[#allocation5 + $0x48] sm:$0xff]  ;;  %v172_v31 = vld [vmem:[#allocation7 + $0x50] sm:$0xff]  ;;  %v173_v32 = vld [vmem:[#allocation7 + $0x58] sm:$0xff] }
  0x3e   :  { %v422_v30 = vpack.c.bf16 %v73_v29, %v72_v28  ;;  %v458_v33 = vpack.c.bf16 %v173_v32, %v172_v31  ;;  %v74_v34 = vld [vmem:[#allocation5 + $0x50] sm:$0xff]  ;;  %v75_v35 = vld [vmem:[#allocation5 + $0x58] sm:$0xff]  ;;  %v174_v37 = vld [vmem:[#allocation7 + $0x60] sm:$0xff] }
  0x3f   :  { %v426_v36 = vpack.c.bf16 %v75_v35, %v74_v34  ;;  %v175_v38 = vld [vmem:[#allocation7 + $0x68] sm:$0xff]  ;;  %v76_v40 = vld [vmem:[#allocation5 + $0x60] sm:$0xff]  ;;  %v176_v43 = vld [vmem:[#allocation7 + $0x70] sm:$0xff] }
  0x40   :  { %v462_v39 = vpack.c.bf16 %v175_v38, %v174_v37  ;;  %v77_v41 = vld [vmem:[#allocation5 + $0x68] sm:$0xff]  ;;  %v177_v44 = vld [vmem:[#allocation7 + $0x78] sm:$0xff]  ;;  %v78_v46 = vld [vmem:[#allocation5 + $0x70] sm:$0xff] }
  0x41   :  { %v430_v42 = vpack.c.bf16 %v77_v41, %v76_v40  ;;  %v466_v45 = vpack.c.bf16 %v177_v44, %v176_v43  ;;  %v79_v47 = vld [vmem:[#allocation5 + $0x78] sm:$0xff]  ;;  %v297_v50 = vld [vmem:[%s691_s4] ss:$0 sm:$0xff]  ;;  %s583_s4 = smov [#allocation8]  }
  0x42   :  { %445 = vmatpush3.bf16.xpose.msra.mxu1 %v442_v5  ;;  %v434_v48 = vpack.c.bf16 %v79_v47, %v78_v46  ;;  %v63_v49 = vld [vmem:[#allocation2 + $0x8] sm:$0xff]  ;;  %v296_v63 = vld [vmem:[%s690_s3] ss:$0 sm:$0xff]  ;;  %s283_s9 = sshll.u32 %s583_s4, 4  ;;  %s284_s9 = int_to_ptr.vmem [resolvable:$true] %s283_s9 }
  0x43   :  { %447 = vmatprep.subr.bf16.mxu1 %v446_v15  ;;  %s550_s10 = scalar_lea.vmem %s284_s9, 256  ;;  %p555_p11 = scmp.lt.s32.totalorder %s284_s9, %s284_s9 }
  0x44   :  { %413 = vmatpush3.bf16.xpose.msra.mxu0 %v410_v11  ;;  %p551_p10 = scmp.ne.s32.totalorder %s284_s9, %s550_s10  ;;  %p556_p12 = scmp.lt.s32.totalorder %s550_s10, %s550_s10 }
  0x45   :  { %415 = vmatprep.subr.bf16.mxu0 %v414_v18 }
  0x46   :  { %p557_p13 = por %p556_p12, %p555_p11 }
  0x48   :  { %p558_p0 = pnand %p557_p13, %p551_p10 }
  0x4a   :  { %449 = vmatpush3.bf16.xpose.msra.mxu1 %v446_v15 }
  0x4b   :  { %451 = vmatprep.subr.bf16.mxu1 %v450_v21 }
  0x4c   :  { %417 = vmatpush3.bf16.xpose.msra.mxu0 %v414_v18 }
  0x4d   :  { %419 = vmatprep.subr.bf16.mxu0 %v418_v24 }
  0x52   :  { %453 = vmatpush3.bf16.xpose.msra.mxu1 %v450_v21 }
  0x53   :  { %455 = vmatprep.subr.bf16.mxu1 %v454_v27 }
  0x54   :  { %421 = vmatpush3.bf16.xpose.msra.mxu0 %v418_v24 }
  0x55   :  { %423 = vmatprep.subr.bf16.mxu0 %v422_v30 }
  0x5a   :  { %457 = vmatpush3.bf16.xpose.msra.mxu1 %v454_v27 }
  0x5b   :  { %459 = vmatprep.subr.bf16.mxu1 %v458_v33 }
  0x5c   :  { %425 = vmatpush3.bf16.xpose.msra.mxu0 %v422_v30 }
  0x5d   :  { %427 = vmatprep.subr.bf16.mxu0 %v426_v36 }
  0x62   :  { %461 = vmatpush3.bf16.xpose.msra.mxu1 %v458_v33 }
  0x63   :  { %463 = vmatprep.subr.bf16.mxu1 %v462_v39 }
  0x64   :  { %429 = vmatpush3.bf16.xpose.msra.mxu0 %v426_v36 }
  0x65   :  { %431 = vmatprep.subr.bf16.mxu0 %v430_v42 }
  0x6a   :  { %465 = vmatpush3.bf16.xpose.msra.mxu1 %v462_v39 }
  0x6b   :  { %467 = vmatprep.subr.bf16.mxu1 %v466_v45 }
  0x6c   :  { %433 = vmatpush3.bf16.xpose.msra.mxu0 %v430_v42 }
  0x6d   :  { %435 = vmatprep.subr.bf16.mxu0 %v434_v48 }
  0x72   :  { %469 = vmatpush3.bf16.xpose.msra.mxu1 %v466_v45 }
  0x74   :  { %437 = vmatpush3.bf16.xpose.msra.mxu0 %v434_v48 }
  0x79   :  { %404 = vmatmul.mubr.f32.vlgmr.msra.gmra.mrb[0].mxu1 %v63_v49 }
  0x7b   :  { %369 = vmatmul.mubr.f32.vlgmr.msra.gmra.mrb[0].mxu0 %v63_v49 }
 0x14c   :  { %v405_v51 = vpop.f32.mrb[0].mxu1 }
 0x14d   :  { %v257_v52 = vadd.f32 %v405_v51, %v297_v50  ;;  %v251_v53 = vpop.f32.mrb[1].mxu1 }
 0x14e   :  { %v252_v54 = vadd.f32 %v297_v50, %v251_v53  ;;  %v370_v56 = vpop.f32.mrb[0].mxu0 }
 0x14f   :  { %v299_v55 = vmul.f32 -1.442695, %v257_v52  ;;  %v153_v58 = vpop.f32.mrb[1].mxu0  ;;  %v159_v0 = vadd.f32 %v370_v56, %v296_v63 }
 0x150   :  { %v298_v57 = vmul.f32 -1.442695, %v252_v54  ;;  %v154_v2 = vadd.f32 %v296_v63, %v153_v58 }
 0x151   :  { %476 = vpow2.f32 %v299_v55 }
 0x152   :  { %478 = vpow2.f32 %v298_v57 }
 0x15b   :  { %v477_v59 = vpop.eup %476 }
 0x15c   :  { %v479_v60 = vpop.eup %478  ;;  %v267_v61 = vadd.f32 1.0, %v477_v59 }
 0x15d   :  { %v266_v62 = vadd.f32 1.0, %v479_v60 }
 0x15e   :  { %480 = vrcp.f32 %v267_v61 }
 0x15f   :  { %482 = vrcp.f32 %v266_v62 }
 0x168   :  { %v481_v1 = vpop.eup %480 }
 0x169   :  { %v483_v3 = vpop.eup %482  ;;  %v273_v4 = vmul.f32 %v481_v1, %v257_v52 }
 0x16a   :  { %v272_v5 = vmul.f32 %v483_v3, %v252_v54 }
 0x16b   :  { %v275_v6 = vmul.f32 %v273_v4, %v159_v0 }
 0x16c   :  { %v274_v7 = vmul.f32 %v272_v5, %v154_v2 }
 0x16d   :  { %277 = vst [vmem:[#allocation8 + $0x8] sm:$0xff] %v275_v6 }
 0x16e   :  { %276 = vst [vmem:[#allocation8] sm:$0xff] %v274_v7 }
 0x16f   :  { %561 = shalt.err (!%p558_p0)
}
 0x170   :  { %s562_s12 = scalar_lea.hbm %s692_s5, 256 }
 0x171   :  { %p563_p1 = scmp.ne.s32.totalorder %s692_s5, %s562_s12  ;;  %p566_p2 = scmp.lt.u32.totalorder %s562_s12, %s692_s5 }
 0x173   :  { %p568_p3 = pnand %p566_p2, %p563_p1 }
 0x175   :  { %571 = shalt.err (!%p568_p3)
}
 0x176   :  { %289 = dma.vmem_to_hbm [thread:$0]  %s284_s9, 256, %s692_s5, [#allocation4], %s580_s30, %s580_s30, %s581_s6  }
 0x177   :  { %576 = dma.done.wait [#allocation4], 256  }
 0x178   :  { %577 = vsyncadd [#allocation4], 4294967040 }
 0x179   :  { %293 = vsyncpa [#allocation3], 1 }
 0x17a   :  { %294 = vsyncpa [#allocation6], 1 }
 0x17b   :  { %295 = vsyncpa [#allocation4], 1 }

</bundles_post_ra>
